<compile_context>
chip_gen: v6e
topology: v6e:2x2x1
jax: 0.10.0
libtpu: 0.0.40
codegen_flags: <defaults>
</compile_context>

<pallas_src>
import functools

import jax
import jax.numpy as jnp
from jax import lax
from jax.experimental import pallas as pl
from jax.experimental.pallas import tpu as pltpu


def _round_up(x, m):
    return ((x + m - 1) // m) * m


def _mlp_kernel(x_ref, w1_ref, b1_ref, w2_ref, b2_ref, w3t_ref, b3_ref, o_ref,
                *, chunk, n_chunks, precision):
    """One grid step: the stroke MLP over a (tm, 64) row tile.

    x_ref : (tm, 64) streamed input tile.
    o_ref : (1, 1, tm) lane-dense output row for this tile.
    Processes the tile in `chunk`-row sub-chunks (n_chunks * chunk == tm).
    """
    # Hoist parameter loads out of the chunk loop (loop-invariant).
    w1 = w1_ref[...]
    b1 = b1_ref[...]
    w2 = w2_ref[...]
    b2 = b2_ref[...]
    w3t = w3t_ref[...]          # (1, 16)
    b3 = b3_ref[...]            # (1, 1)

    def body(c, carry):
        r0 = pl.multiple_of(c * chunk, chunk)
        xc = x_ref[pl.ds(r0, chunk), :]                          # (chunk, 64)

        # Linear(64 -> H) + ReLU   (MXU, f32 accumulation)
        h1 = jnp.dot(xc, w1, preferred_element_type=jnp.float32,
                     precision=precision) + b1
        h1 = jnp.maximum(h1, 0.0)

        # Dropout(p=0.1): identity in eval mode.
        # TODO(synk): train-mode dropout needs pltpu.prng_seed/prng_random_bits.

        # Linear(H -> 16) + ReLU   (MXU, f32 accumulation)
        h2 = jnp.dot(h1.astype(w2.dtype), w2,
                     preferred_element_type=jnp.float32,
                     precision=precision) + b2
        h2 = jnp.maximum(h2, 0.0)                                # (chunk, 16)

        # Linear(16 -> 1): contract on the MXU and emit the lane-dense
        # (1, chunk) row directly (w3t is (1, 16); both operands contract dim 1).
        out = lax.dot_general(
            w3t, h2.astype(w3t.dtype),
            dimension_numbers=(((1,), (1,)), ((), ())),
            preferred_element_type=jnp.float32,
            precision=precision) + b3                            # (1, chunk)

        # 128-aligned dynamic lane offset -> unmasked vector stores.
        o_ref[:, :, pl.ds(r0, chunk)] = out[None].astype(o_ref.dtype)
        return carry

    lax.fori_loop(0, n_chunks, body, 0, unroll=(n_chunks <= 8))


def _resident_spec(shape):
    """BlockSpec for a parameter that is identical at every grid step."""
    index_map = lambda i: (0,) * len(shape)
    if hasattr(pl, "Buffered"):
        try:
            # Constant index map -> one VMEM buffer suffices; skip the second
            # (double) buffer Pallas would otherwise allocate.
            return pl.BlockSpec(shape, index_map, pipeline_mode=pl.Buffered(1))
        except TypeError:
            pass
    return pl.BlockSpec(shape, index_map)


def _is_v7x():
    try:
        return "v7" in jax.devices()[0].device_kind.lower()
    except Exception:
        return False


@functools.partial(
    jax.jit,
    static_argnames=("tm", "compute_dtype", "core_parallel", "training", "precision"))
def stroke_decoder_pallas(x, params, *, tm=4096, compute_dtype=None,
                          core_parallel=None, training=False, precision=None):
    """x: (N, 64) stroke features. Returns (N, 1).

    tm            : row-tile size (rounded to 128); sweep 2048..8192 at large N.
    compute_dtype : optional dtype for x/weights inside the kernel (e.g.
                    jnp.bfloat16). Default: use x.dtype as-is (no extra copy).
                    MXU accumulation is always f32.
    core_parallel : None = auto (True on v7x, 2 TensorCores/chip), else bool.
    precision     : optional lax.Precision for the matmuls (e.g. HIGHEST for
                    bit-closer f32 parity; cost is hidden under the HBM DMA).
    """
    if training:
        # TODO(synk): train-mode Dropout(p=0.1) not implemented (needs pltpu.prng_*).
        raise NotImplementedError("stroke_decoder_pallas implements eval-mode only")

    w1, b1, w2, b2, w3, b3 = params
    n, f_in = x.shape
    assert f_in == 64
    hidden = w1.shape[1]

    cdtype = jnp.dtype(compute_dtype) if compute_dtype is not None else x.dtype
    if x.dtype != cdtype:
        # NOTE: this materializes one extra HBM copy of x; for peak HBM
        # efficiency feed x already in the compute dtype (e.g. bf16 upstream).
        x = x.astype(cdtype)
    w1 = w1.astype(cdtype)
    b1 = b1.astype(cdtype)
    w2 = w2.astype(cdtype)
    b2 = b2.astype(cdtype)
    w3t = w3.reshape(16, 1).T.astype(cdtype)      # (1, 16)
    b3 = b3.reshape(1, 1).astype(cdtype)          # (1, 1)

    # Pad rows only to the 128 quantum (not to tm): waste bounded at <128 rows,
    # and no pad copy at all when N is already 128-aligned.
    n_pad = _round_up(n, 128)
    if n_pad != n:
        x = jnp.pad(x, ((0, n_pad - n), (0, 0)))

    if core_parallel is None:
        core_parallel = _is_v7x()

    # Row tile: large to amortize per-step overhead, never larger than padded N,
    # multiple of 128 so the output row stays lane-dense.
    tm_eff = min(_round_up(max(tm, 128), 128), n_pad)
    if core_parallel:
        if n_pad >= 256:
            # Guarantee >= 2 tiles so both v7x TensorCores get work.
            tm_eff = min(tm_eff, _round_up(n_pad // 2, 128))
        else:
            core_parallel = False
    n_tiles = int(pl.cdiv(n_pad, tm_eff))

    # In-kernel sub-chunk size (keeps h1/h2 in vregs / small VMEM temporaries).
    if tm_eff % 512 == 0:
        chunk = 512
    elif tm_eff % 256 == 0:
        chunk = 256
    else:
        chunk = 128
    n_chunks = tm_eff // chunk

    # VMEM budget: the (tm, 64) x tile is lane-padded to 128 lanes in VMEM (2x
    # raw bytes) and double-buffered; h1/h2 temporaries are per-chunk f32.
    itemsize = jnp.dtype(cdtype).itemsize
    x_tile_bytes = 2 * tm_eff * 128 * itemsize
    out_tile_bytes = 2 * tm_eff * itemsize
    param_bytes = 2 * (64 * hidden + hidden + hidden * 16 + 16 + 16 + 1) * itemsize
    temp_bytes = chunk * (hidden + 128 + 128) * 4
    vmem_limit = int(min(max(2 * (x_tile_bytes + out_tile_bytes
                                  + param_bytes + temp_bytes),
                             16 * 2**20), 32 * 2**20))

    row_sem = pltpu.CORE_PARALLEL if core_parallel else "parallel"

    kernel = functools.partial(_mlp_kernel, chunk=chunk, n_chunks=n_chunks,
                               precision=precision)

    out_tiles = pl.pallas_call(
        kernel,
        out_shape=jax.ShapeDtypeStruct((n_tiles, 1, tm_eff), x.dtype),
        grid_spec=pltpu.PrefetchScalarGridSpec(
            num_scalar_prefetch=0,
            grid=(n_tiles,),
            in_specs=[
                pl.BlockSpec((tm_eff, 64), lambda i: (i, 0)),   # x (streamed)
                _resident_spec((64, hidden)),                   # w1 (resident)
                _resident_spec((1, hidden)),                    # b1
                _resident_spec((hidden, 16)),                   # w2
                _resident_spec((1, 16)),                        # b2
                _resident_spec((1, 16)),                        # w3^T
                _resident_spec((1, 1)),                         # b3
            ],
            out_specs=pl.BlockSpec((1, 1, tm_eff), lambda i: (i, 0, 0)),
        ),
        compiler_params=pltpu.CompilerParams(
            dimension_semantics=(row_sem,),
            vmem_limit_bytes=vmem_limit,
        ),
    )(x, w1, b1, w2, b2, w3t, b3)

    # (n_tiles, 1, tm) -> flat rows -> drop the padded / boundary-block tail.
    return out_tiles.reshape(n_tiles * tm_eff, 1)[:n]


def init_params(key, hidden_channels=128, dtype=jnp.float32):
    """Deterministic init mirroring nn.Linear default (uniform +/- 1/sqrt(fan_in))."""
    def linear(key, fan_in, fan_out):
        kw, kb = jax.random.split(key)
        bound = 1.0 / jnp.sqrt(fan_in)
        w = jax.random.uniform(kw, (fan_in, fan_out), dtype, -bound, bound)
        b = jax.random.uniform(kb, (1, fan_out), dtype, -bound, bound)
        return w, b

    k1, k2, k3 = jax.random.split(key, 3)
    w1, b1 = linear(k1, 64, hidden_channels)
    w2, b2 = linear(k2, hidden_channels, 16)
    w3, b3 = linear(k3, 16, 1)
    return (w1, b1, w2, b2, w3, b3)


def stroke_decoder_ref(x, params):
    """Pure-JAX reference (computed in f32 from the given x/params dtypes)."""
    w1, b1, w2, b2, w3, b3 = [p.astype(jnp.float32) for p in params]
    xf = x.astype(jnp.float32)
    h1 = jnp.maximum(xf @ w1 + b1, 0.0)
    h2 = jnp.maximum(h1 @ w2 + b2, 0.0)
    # Explicit sum-product for the 16 -> 1 layer keeps the check independent of
    # XLA's default matmul precision for this tiny contraction.
    return jnp.sum(h2 * w3[:, 0], axis=-1, keepdims=True) + b3.reshape(1, 1)


if __name__ == "__main__":
    key = jax.random.PRNGKey(0)
    k_param, k_x = jax.random.split(key)

    hidden_channels = 128
    params = init_params(k_param, hidden_channels)

    # Case 1: small N, single tile (tm auto-clips to the padded N).
    n1 = 256
    x1 = jax.random.normal(jax.random.fold_in(k_x, 1), (n1, 64), dtype=jnp.float32)
    x_dict = {"stroke": x1}
    out1 = jax.block_until_ready(stroke_decoder_pallas(x_dict["stroke"], params))
    assert out1.shape == (n1, 1)
    assert jnp.allclose(out1, stroke_decoder_ref(x1, params), atol=1e-3, rtol=1e-3), \
        "mismatch vs reference (case 1)"

    # Case 2: ragged N (pad-to-128 path + slice-back).
    n2 = 200
    x2 = jax.random.normal(jax.random.fold_in(k_x, 2), (n2, 64), dtype=jnp.float32)
    out2 = jax.block_until_ready(stroke_decoder_pallas(x2, params))
    assert out2.shape == (n2, 1)
    assert jnp.allclose(out2, stroke_decoder_ref(x2, params), atol=1e-3, rtol=1e-3), \
        "mismatch vs reference (case 2)"

    # Case 3: multi-tile grid with a partial boundary block (1152 rows, tm=512
    # -> 3 tiles, last tile only 128 valid rows) + resident weights.
    n3 = 1152
    x3 = jax.random.normal(jax.random.fold_in(k_x, 3), (n3, 64), dtype=jnp.float32)
    out3 = jax.block_until_ready(stroke_decoder_pallas(x3, params, tm=512))
    assert out3.shape == (n3, 1)
    assert jnp.allclose(out3, stroke_decoder_ref(x3, params), atol=1e-3, rtol=1e-3), \
        "mismatch vs reference (case 3)"

    # Case 4: bf16 input path (halved HBM traffic; f32 MXU accumulation).
    n4 = 512
    x4 = jax.random.normal(jax.random.fold_in(k_x, 4), (n4, 64),
                           dtype=jnp.float32).astype(jnp.bfloat16)
    params_bf16 = tuple(p.astype(jnp.bfloat16) for p in params)
    out4 = jax.block_until_ready(
        stroke_decoder_pallas(x4, params, compute_dtype=jnp.bfloat16, tm=256))
    assert out4.shape == (n4, 1)
    ref4 = stroke_decoder_ref(x4, params_bf16)
    assert jnp.allclose(out4.astype(jnp.float32), ref4, atol=5e-2, rtol=5e-2), \
        "mismatch vs reference (case 4, bf16)"

    print("KERNEL_OK")
</pallas_src>

<mosaic_0001>
module attributes {stable_mosaic.version = 11 : i64} {
  func.func @_mlp_kernel(%arg0: i32, %arg1: memref<256x64xf32, #tpu.memory_space<vmem>>, %arg2: memref<64x128xf32, #tpu.memory_space<vmem>>, %arg3: memref<1x128xf32, #tpu.memory_space<vmem>>, %arg4: memref<128x16xf32, #tpu.memory_space<vmem>>, %arg5: memref<1x16xf32, #tpu.memory_space<vmem>>, %arg6: memref<1x16xf32, #tpu.memory_space<vmem>>, %arg7: memref<1x1xf32, #tpu.memory_space<vmem>>, %arg8: memref<1x1x256xf32, #tpu.memory_space<vmem>>) attributes {dimension_semantics = [#tpu.dimension_semantics<parallel>], iteration_bounds = array<i64: 1>, scalar_prefetch = 0 : i64, scratch_operands = 0 : i64, tpu.core_type = #tpu.core_type<tc>, window_params = [{transform_indices = @transform_0, window_bounds = array<i64: 256, 64>}, {pipeline_mode = #tpu.pipeline_mode<synchronous>, transform_indices = @transform_1, window_bounds = array<i64: 64, 128>}, {pipeline_mode = #tpu.pipeline_mode<synchronous>, transform_indices = @transform_2, window_bounds = array<i64: 1, 128>}, {pipeline_mode = #tpu.pipeline_mode<synchronous>, transform_indices = @transform_3, window_bounds = array<i64: 128, 16>}, {pipeline_mode = #tpu.pipeline_mode<synchronous>, transform_indices = @transform_4, window_bounds = array<i64: 1, 16>}, {pipeline_mode = #tpu.pipeline_mode<synchronous>, transform_indices = @transform_5, window_bounds = array<i64: 1, 16>}, {pipeline_mode = #tpu.pipeline_mode<synchronous>, transform_indices = @transform_6, window_bounds = array<i64: 1, 1>}, {transform_indices = @transform_7, window_bounds = array<i64: 1, 1, 256>}]} {
    %c0 = arith.constant 0 : index
    %c0_0 = arith.constant 0 : index
    %0 = vector.load %arg2[%c0, %c0_0] : memref<64x128xf32, #tpu.memory_space<vmem>>, vector<64x128xf32>
    %c0_1 = arith.constant 0 : index
    %c0_2 = arith.constant 0 : index
    %1 = vector.load %arg3[%c0_1, %c0_2] : memref<1x128xf32, #tpu.memory_space<vmem>>, vector<1x128xf32>
    %c0_3 = arith.constant 0 : index
    %c0_4 = arith.constant 0 : index
    %2 = vector.load %arg4[%c0_3, %c0_4] : memref<128x16xf32, #tpu.memory_space<vmem>>, vector<128x16xf32>
    %c0_5 = arith.constant 0 : index
    %c0_6 = arith.constant 0 : index
    %3 = vector.load %arg5[%c0_5, %c0_6] : memref<1x16xf32, #tpu.memory_space<vmem>>, vector<1x16xf32>
    %c0_7 = arith.constant 0 : index
    %c0_8 = arith.constant 0 : index
    %4 = vector.load %arg6[%c0_7, %c0_8] : memref<1x16xf32, #tpu.memory_space<vmem>>, vector<1x16xf32>
    %c0_9 = arith.constant 0 : index
    %c0_10 = arith.constant 0 : index
    %5 = vector.load %arg7[%c0_9, %c0_10] : memref<1x1xf32, #tpu.memory_space<vmem>>, vector<1x1xf32>
    %c0_i32 = arith.constant 0 : i32
    %c256_i32 = arith.constant 256 : i32
    %6 = arith.muli %c0_i32, %c256_i32 : i32
    %7 = tpu.assume_multiple %6, 256 : i32
    %8 = arith.index_cast %7 : i32 to index
    %c0_11 = arith.constant 0 : index
    %9 = vector.load %arg1[%8, %c0_11] : memref<256x64xf32, #tpu.memory_space<vmem>>, vector<256x64xf32>
    %cst = arith.constant dense<0.000000e+00> : vector<256x128xf32>
    %10 = tpu.matmul %9, %0, %cst {dimension_numbers = #tpu.dot_dimension_numbers<[1], [0], [0], [1], [0, 0, 1, 1], [], []>} : vector<256x64xf32>, vector<64x128xf32>, vector<256x128xf32> -> vector<256x128xf32>
    %11 = vector.broadcast %1 : vector<1x128xf32> to vector<256x128xf32>
    %12 = arith.addf %10, %11 : vector<256x128xf32>
    %cst_12 = arith.constant 0.000000e+00 : f32
    %13 = vector.broadcast %cst_12 : f32 to vector<256x128xf32>
    %14 = arith.maximumf %12, %13 : vector<256x128xf32>
    %cst_13 = arith.constant dense<0.000000e+00> : vector<256x16xf32>
    %15 = tpu.matmul %14, %2, %cst_13 {dimension_numbers = #tpu.dot_dimension_numbers<[1], [0], [0], [1], [0, 0, 1, 1], [], []>} : vector<256x128xf32>, vector<128x16xf32>, vector<256x16xf32> -> vector<256x16xf32>
    %16 = vector.broadcast %3 : vector<1x16xf32> to vector<256x16xf32>
    %17 = arith.addf %15, %16 : vector<256x16xf32>
    %cst_14 = arith.constant 0.000000e+00 : f32
    %18 = vector.broadcast %cst_14 : f32 to vector<256x16xf32>
    %19 = arith.maximumf %17, %18 : vector<256x16xf32>
    %cst_15 = arith.constant dense<0.000000e+00> : vector<1x256xf32>
    %20 = tpu.matmul %4, %19, %cst_15 {dimension_numbers = #tpu.dot_dimension_numbers<[1], [1], [0], [0], [0, 0, 1, 0], [], []>} : vector<1x16xf32>, vector<256x16xf32>, vector<1x256xf32> -> vector<1x256xf32>
    %21 = vector.broadcast %5 : vector<1x1xf32> to vector<1x256xf32>
    %22 = arith.addf %20, %21 : vector<1x256xf32>
    %23 = vector.shape_cast %22 : vector<1x256xf32> to vector<1x1x256xf32>
    %c0_16 = arith.constant 0 : index
    %c0_17 = arith.constant 0 : index
    %24 = arith.index_cast %7 : i32 to index
    %25 = vector.load %arg8[%c0_16, %c0_17, %24] : memref<1x1x256xf32, #tpu.memory_space<vmem>>, vector<1x1x256xf32>
    tpu.vector_store %arg8[%c0_16, %c0_17, %24], %23 {strides = array<i32>} : memref<1x1x256xf32, #tpu.memory_space<vmem>>, vector<1x1x256xf32>,
    %c1_i32 = arith.constant 1 : i32
    return
  }
  func.func @transform_0(%arg0: i32) -> (i32, i32) {
    %c0_i32 = arith.constant 0 : i32
    %c0_i32_0 = arith.constant 0 : i32
    return %arg0, %c0_i32 : i32, i32
  }
  func.func @transform_1(%arg0: i32) -> (i32, i32) {
    %c0_i32 = arith.constant 0 : i32
    %c0_i32_0 = arith.constant 0 : i32
    %c0_i32_1 = arith.constant 0 : i32
    return %c0_i32, %c0_i32_0 : i32, i32
  }
  func.func @transform_2(%arg0: i32) -> (i32, i32) {
    %c0_i32 = arith.constant 0 : i32
    %c0_i32_0 = arith.constant 0 : i32
    %c0_i32_1 = arith.constant 0 : i32
    return %c0_i32, %c0_i32_0 : i32, i32
  }
  func.func @transform_3(%arg0: i32) -> (i32, i32) {
    %c0_i32 = arith.constant 0 : i32
    %c0_i32_0 = arith.constant 0 : i32
    %c0_i32_1 = arith.constant 0 : i32
    return %c0_i32, %c0_i32_0 : i32, i32
  }
  func.func @transform_4(%arg0: i32) -> (i32, i32) {
    %c0_i32 = arith.constant 0 : i32
    %c0_i32_0 = arith.constant 0 : i32
    %c0_i32_1 = arith.constant 0 : i32
    return %c0_i32, %c0_i32_0 : i32, i32
  }
  func.func @transform_5(%arg0: i32) -> (i32, i32) {
    %c0_i32 = arith.constant 0 : i32
    %c0_i32_0 = arith.constant 0 : i32
    %c0_i32_1 = arith.constant 0 : i32
    return %c0_i32, %c0_i32_0 : i32, i32
  }
  func.func @transform_6(%arg0: i32) -> (i32, i32) {
    %c0_i32 = arith.constant 0 : i32
    %c0_i32_0 = arith.constant 0 : i32
    %c0_i32_1 = arith.constant 0 : i32
    return %c0_i32, %c0_i32_0 : i32, i32
  }
  func.func @transform_7(%arg0: i32) -> (i32, i32, i32) {
    %c0_i32 = arith.constant 0 : i32
    %c0_i32_0 = arith.constant 0 : i32
    %c0_i32_1 = arith.constant 0 : i32
    return %arg0, %c0_i32, %c0_i32_0 : i32, i32, i32
  }
}

</mosaic_0001>

<bundles_post_ra>
// kernel: stroke_decoder_pallas.1
= control target key start
LH: loop header
LB: loop body
LE: loop exit
PB: predicated region body
PF: predicated region fallthrough
CT: control target
= control target key end

     0   :  { %s1697_s0 = inlined_call_operand.vmem [shape: f32[256,64], index: 0, kind: input, shape index: {}]   ;;  %s1698_s1 = inlined_call_operand.vmem [shape: f32[64,128], index: 1, kind: input, shape index: {}]   ;;  %s1699_s2 = inlined_call_operand.vmem [shape: f32[1,128], index: 2, kind: input, shape index: {}]   ;;  %s1700_s3 = inlined_call_operand.vmem [shape: f32[128,16], index: 3, kind: input, shape index: {}]   ;;  %s1701_s4 = inlined_call_operand.vmem [shape: f32[1,16], index: 4, kind: input, shape index: {}]   ;;  %s1702_s5 = inlined_call_operand.vmem [shape: f32[1,16], index: 5, kind: input, shape index: {}]   ;;  %s1703_s6 = inlined_call_operand.<no memory space> [shape: f32[1,1], index: 6, kind: input, shape index: {}]   ;;  %s1704_s7 = inlined_call_operand.hbm [shape: f32[1,1,256], index: 7, kind: output, shape index: {}]  }
   0x1   :  { %v12_v0 = vstv %s1703_s6 }
   0x2   :  { %13 = vst [vmem:[#allocation2] sm:$0x1] %v12_v0 }
   0x3   :  { %v36_v1 = vld [vmem:[%s1698_s1 + $0x38] sm:$0xff]  ;;  %v35_v2 = vld [vmem:[%s1698_s1 + $0x30] sm:$0xff]  ;;  %vm95_vm0 = vcmask 523264   ;;  %v34_v3 = vld [vmem:[%s1698_s1 + $0x28] sm:$0xff] }
   0x4   :  { %1118 = vmatprep.subr.mxu0 %v36_v1  ;;  %v57_v4 = vld [vmem:[%s1697_s0] sm:$0xff]  ;;  %v32_v6 = vld [vmem:[%s1698_s1 + $0x18] sm:$0xff]  ;;  %v31_v7 = vld [vmem:[%s1698_s1 + $0x10] sm:$0xff] }
   0x5   :  { %1119 = vmatpush3.msra.mxu0 %v36_v1  ;;  %1134 = vmatprep.mubr.msk.f32.mxu0 %vm95_vm0, %v57_v4  ;;  %v33_v5 = vld [vmem:[%s1698_s1 + $0x20] sm:$0xff]  ;;  %v30_v8 = vld [vmem:[%s1698_s1 + $0x8] sm:$0xff]  ;;  %v53_v10 = vld [vmem:[%s1700_s3 + $0x78] sm:$0xff] }
   0x6   :  { %1120 = vmatprep.subr.mxu0 %v35_v2  ;;  %v29_v9 = vld [vmem:[%s1698_s1] sm:$0xff]  ;;  %v52_v11 = vld [vmem:[%s1700_s3 + $0x70] sm:$0xff]  ;;  %v58_v12 = vld [vmem:[%s1697_s0 + $0x8] sm:$0xff]  ;;  %1182 = vmatprep.subr.mxu1 %v53_v10 }
   0x7   :  { %1121 = vmatpush3.msra.mxu0 %v35_v2  ;;  %v59_v13 = vld [vmem:[%s1697_s0 + $0x10] sm:$0xff]  ;;  %1183 = vmatpush3.msra.mxu1 %v53_v10  ;;  %v51_v14 = vld [vmem:[%s1700_s3 + $0x68] sm:$0xff]  ;;  %v50_v15 = vld [vmem:[%s1700_s3 + $0x60] sm:$0xff] }
   0x8   :  { %1122 = vmatprep.subr.mxu0 %v34_v3  ;;  %1184 = vmatprep.subr.mxu1 %v52_v11 }
   0x9   :  { %1123 = vmatpush3.msra.mxu0 %v34_v3  ;;  %1185 = vmatpush3.msra.mxu1 %v52_v11 }
   0xa   :  { %1124 = vmatprep.subr.mxu0 %v33_v5 }
   0xb   :  { %1125 = vmatpush3.msra.mxu0 %v33_v5 }
   0xc   :  { %1126 = vmatprep.subr.mxu0 %v32_v6 }
   0xd   :  { %1127 = vmatpush3.msra.mxu0 %v32_v6 }
   0xe   :  { %1128 = vmatprep.subr.mxu0 %v31_v7 }
   0xf   :  { %1129 = vmatpush3.msra.mxu0 %v31_v7 }
  0x10   :  { %1130 = vmatprep.subr.mxu0 %v30_v8 }
  0x11   :  { %1131 = vmatpush3.msra.mxu0 %v30_v8 }
  0x12   :  { %1132 = vmatprep.subr.mxu0 %v29_v9 }
  0x13   :  { %1133 = vmatpush3.msra.mxu0 %v29_v9 }
  0x14   :  { %1135 = vmatmul.mubr.msk.f32.vlgmr.msra.gmra.mxu0 %vm95_vm0, %v58_v12 }
  0x15   :  { %14 = vsyncpa [#allocation4], 0  ;;  %1137 = vmatprep.mubr.msk.f32.mxu0 %vm95_vm0, %v59_v13  ;;  %v60_v16 = vld [vmem:[%s1697_s0 + $0x18] sm:$0xff]  ;;  %1186 = vmatprep.subr.mxu1 %v51_v14  ;;  %v61_v17 = vld [vmem:[%s1697_s0 + $0x20] sm:$0xff]  ;;  %vm721_vm1 = vcmask 130048  }
  0x16   :  { %1187 = vmatpush3.msra.mxu1 %v51_v14  ;;  %v49_v18 = vld [vmem:[%s1700_s3 + $0x58] sm:$0xff]  ;;  %v48_v19 = vld [vmem:[%s1700_s3 + $0x50] sm:$0xff]  ;;  %v62_v20 = vld [vmem:[%s1697_s0 + $0x28] sm:$0xff] }
  0x17   :  { %1188 = vmatprep.subr.mxu1 %v50_v15  ;;  %v63_v21 = vld [vmem:[%s1697_s0 + $0x30] sm:$0xff]  ;;  %v47_v22 = vld [vmem:[%s1700_s3 + $0x48] sm:$0xff]  ;;  %v46_v23 = vld [vmem:[%s1700_s3 + $0x40] sm:$0xff] }
  0x18   :  { %1138 = vmatmul.mubr.msk.f32.gmra.mxu0 %vm95_vm0, %v60_v16  ;;  %1189 = vmatpush3.msra.mxu1 %v50_v15  ;;  %v64_v24 = vld [vmem:[%s1697_s0 + $0x38] sm:$0xff]  ;;  %v65_v25 = vld [vmem:[%s1697_s0 + $0x40] sm:$0xff]  ;;  %v44_v27 = vld [vmem:[%s1700_s3 + $0x30] sm:$0xff] }
  0x19   :  { %1140 = vmatprep.mubr.msk.f32.mxu0 %vm95_vm0, %v61_v17  ;;  %1190 = vmatprep.subr.mxu1 %v49_v18  ;;  %v45_v26 = vld [vmem:[%s1700_s3 + $0x38] sm:$0xff]  ;;  %v66_v28 = vld [vmem:[%s1697_s0 + $0x48] sm:$0xff]  ;;  %v67_v29 = vld [vmem:[%s1697_s0 + $0x50] sm:$0xff] }
  0x1a   :  { %1191 = vmatpush3.msra.mxu1 %v49_v18  ;;  %v43_v30 = vld [vmem:[%s1700_s3 + $0x28] sm:$0xff]  ;;  %v42_v31 = vld [vmem:[%s1700_s3 + $0x20] sm:$0xff]  ;;  %v68_v32 = vld [vmem:[%s1697_s0 + $0x58] sm:$0xff] }
  0x1b   :  { %1192 = vmatprep.subr.mxu1 %v48_v19  ;;  %v69_v33 = vld [vmem:[%s1697_s0 + $0x60] sm:$0xff]  ;;  %v70_v34 = vld [vmem:[%s1697_s0 + $0x68] sm:$0xff]  ;;  %v71_v35 = vld [vmem:[%s1697_s0 + $0x70] sm:$0xff] }
  0x1c   :  { %1141 = vmatmul.mubr.msk.f32.gmra.mxu0 %vm95_vm0, %v62_v20  ;;  %1193 = vmatpush3.msra.mxu1 %v48_v19  ;;  %v72_v36 = vld [vmem:[%s1697_s0 + $0x78] sm:$0xff]  ;;  %v73_v37 = vld [vmem:[%s1697_s0 + $0x80] sm:$0xff]  ;;  %v74_v38 = vld [vmem:[%s1697_s0 + $0x88] sm:$0xff] }
  0x1d   :  { %1143 = vmatprep.mubr.msk.f32.mxu0 %vm95_vm0, %v63_v21  ;;  %1194 = vmatprep.subr.mxu1 %v47_v22  ;;  %v75_v39 = vld [vmem:[%s1697_s0 + $0x90] sm:$0xff]  ;;  %v76_v40 = vld [vmem:[%s1697_s0 + $0x98] sm:$0xff]  ;;  %v77_v41 = vld [vmem:[%s1697_s0 + $0xa0] sm:$0xff] }
  0x1e   :  { %1195 = vmatpush3.msra.mxu1 %v47_v22  ;;  %v78_v42 = vld [vmem:[%s1697_s0 + $0xa8] sm:$0xff]  ;;  %v79_v43 = vld [vmem:[%s1697_s0 + $0xb0] sm:$0xff]  ;;  %v80_v44 = vld [vmem:[%s1697_s0 + $0xb8] sm:$0xff] }
  0x1f   :  { %1196 = vmatprep.subr.mxu1 %v46_v23  ;;  %v81_v45 = vld [vmem:[%s1697_s0 + $0xc0] sm:$0xff]  ;;  %v82_v46 = vld [vmem:[%s1697_s0 + $0xc8] sm:$0xff]  ;;  %v83_v47 = vld [vmem:[%s1697_s0 + $0xd0] sm:$0xff] }
  0x20   :  { %1144 = vmatmul.mubr.msk.f32.gmra.mxu0 %vm95_vm0, %v64_v24  ;;  %1197 = vmatpush3.msra.mxu1 %v46_v23  ;;  %v84_v48 = vld [vmem:[%s1697_s0 + $0xd8] sm:$0xff]  ;;  %v85_v49 = vld [vmem:[%s1697_s0 + $0xe0] sm:$0xff]  ;;  %v86_v50 = vld [vmem:[%s1697_s0 + $0xe8] sm:$0xff] }
  0x21   :  { %1146 = vmatprep.mubr.msk.f32.mxu0 %vm95_vm0, %v65_v25  ;;  %1198 = vmatprep.subr.mxu1 %v45_v26  ;;  %v87_v51 = vld [vmem:[%s1697_s0 + $0xf0] sm:$0xff]  ;;  %v88_v52 = vld [vmem:[%s1697_s0 + $0xf8] sm:$0xff]  ;;  %v39_v55 = vld [vmem:[%s1700_s3 + $0x8] sm:$0xff] }
  0x22   :  { %1199 = vmatpush3.msra.mxu1 %v45_v26  ;;  %v41_v53 = vld [vmem:[%s1700_s3 + $0x18] sm:$0xff]  ;;  %v40_v54 = vld [vmem:[%s1700_s3 + $0x10] sm:$0xff]  ;;  %v38_v56 = vld [vmem:[%s1700_s3] sm:$0xff] }
  0x23   :  { %1200 = vmatprep.subr.mxu1 %v44_v27  ;;  %v1537_v57 = vld [vmem:[%s1699_s2] ss:$0 sm:$0xff] }
  0x24   :  { %1147 = vmatmul.mubr.msk.f32.gmra.mxu0 %vm95_vm0, %v66_v28  ;;  %1201 = vmatpush3.msra.mxu1 %v44_v27 }
  0x25   :  { %1149 = vmatprep.mubr.msk.f32.mxu0 %vm95_vm0, %v67_v29  ;;  %1202 = vmatprep.subr.mxu1 %v43_v30 }
  0x26   :  { %1203 = vmatpush3.msra.mxu1 %v43_v30 }
  0x27   :  { %1204 = vmatprep.subr.mxu1 %v42_v31 }
  0x28   :  { %1150 = vmatmul.mubr.msk.f32.gmra.mxu0 %vm95_vm0, %v68_v32  ;;  %1205 = vmatpush3.msra.mxu1 %v42_v31 }
  0x29   :  { %1152 = vmatprep.mubr.msk.f32.mxu0 %vm95_vm0, %v69_v33  ;;  %1206 = vmatprep.subr.mxu1 %v41_v53 }
  0x2a   :  { %1207 = vmatpush3.msra.mxu1 %v41_v53 }
  0x2b   :  { %1208 = vmatprep.subr.mxu1 %v40_v54 }
  0x2c   :  { %1153 = vmatmul.mubr.msk.f32.gmra.mxu0 %vm95_vm0, %v70_v34  ;;  %1209 = vmatpush3.msra.mxu1 %v40_v54 }
  0x2d   :  { %1155 = vmatprep.mubr.msk.f32.mxu0 %vm95_vm0, %v71_v35  ;;  %1210 = vmatprep.subr.mxu1 %v39_v55 }
  0x2e   :  { %1211 = vmatpush3.msra.mxu1 %v39_v55 }
  0x2f   :  { %1212 = vmatprep.subr.mxu1 %v38_v56 }
  0x30   :  { %1156 = vmatmul.mubr.msk.f32.gmra.mxu0 %vm95_vm0, %v72_v36  ;;  %1213 = vmatpush3.msra.mxu1 %v38_v56 }
  0x31   :  { %1158 = vmatprep.mubr.msk.f32.mxu0 %vm95_vm0, %v73_v37 }
  0x34   :  { %1159 = vmatmul.mubr.msk.f32.gmra.mxu0 %vm95_vm0, %v74_v38 }
  0x35   :  { %1161 = vmatprep.mubr.msk.f32.mxu0 %vm95_vm0, %v75_v39 }
  0x38   :  { %1162 = vmatmul.mubr.msk.f32.gmra.mxu0 %vm95_vm0, %v76_v40 }
  0x39   :  { %1164 = vmatprep.mubr.msk.f32.mxu0 %vm95_vm0, %v77_v41 }
  0x3c   :  { %1165 = vmatmul.mubr.msk.f32.gmra.mxu0 %vm95_vm0, %v78_v42 }
  0x3d   :  { %1167 = vmatprep.mubr.msk.f32.mxu0 %vm95_vm0, %v79_v43 }
  0x40   :  { %1168 = vmatmul.mubr.msk.f32.gmra.mxu0 %vm95_vm0, %v80_v44 }
  0x41   :  { %1170 = vmatprep.mubr.msk.f32.mxu0 %vm95_vm0, %v81_v45 }
  0x44   :  { %1171 = vmatmul.mubr.msk.f32.gmra.mxu0 %vm95_vm0, %v82_v46 }
  0x45   :  { %1173 = vmatprep.mubr.msk.f32.mxu0 %vm95_vm0, %v83_v47 }
  0x48   :  { %1174 = vmatmul.mubr.msk.f32.gmra.mxu0 %vm95_vm0, %v84_v48 }
  0x49   :  { %1176 = vmatprep.mubr.msk.f32.mxu0 %vm95_vm0, %v85_v49 }
  0x4c   :  { %1177 = vmatmul.mubr.msk.f32.gmra.mxu0 %vm95_vm0, %v86_v50 }
  0x4d   :  { %1179 = vmatprep.mubr.msk.f32.mxu0 %vm95_vm0, %v87_v51 }
  0x50   :  { %1180 = vmatmul.mubr.msk.f32.gmra.mxu0 %vm95_vm0, %v88_v52 }
  0xd4   :  { %v1136_v58 = vpop.f32.mrf.mxu0 }
  0xd5   :  { %v264_v59 = vadd.f32 %v1136_v58, %v1537_v57 }
  0xd6   :  { %v258_v60 = vpop.f32.mrf.mxu0 }
  0xd7   :  { %v259_v61 = vadd.f32 %v1537_v57, %v258_v60  ;;  %v418_v0 = vmax.f32 %v264_v59, 0.0 }
  0xd8   :  { %v1139_v62 = vpop.f32.mrf.mxu0 }
  0xd9   :  { %v417_v63 = vmax.f32 %v259_v61, 0.0  ;;  %v274_v1 = vadd.f32 %v1139_v62, %v1537_v57 }
  0xda   :  { %v268_v2 = vpop.f32.mrf.mxu0 }
  0xdb   :  { %v269_v3 = vadd.f32 %v1537_v57, %v268_v2  ;;  %1214 = vmatprep.mubr.f32.mxu1 %v417_v63  ;;  %v420_v6 = vmax.f32 %v274_v1, 0.0 }
  0xdc   :  { %v1142_v4 = vpop.f32.mrf.mxu0  ;;  %1215 = vmatmul.mubr.f32.vlgmr.msra.gmra.mxu1 %v418_v0 }
  0xdd   :  { %v419_v5 = vmax.f32 %v269_v3, 0.0  ;;  %v284_v7 = vadd.f32 %v1142_v4, %v1537_v57 }
  0xde   :  { %v278_v8 = vpop.f32.mrf.mxu0 }
  0xdf   :  { %v279_v9 = vadd.f32 %v1537_v57, %v278_v8  ;;  %1217 = vmatprep.mubr.f32.mxu1 %v419_v5  ;;  %v422_v12 = vmax.f32 %v284_v7, 0.0 }
  0xe0   :  { %v1145_v10 = vpop.f32.mrf.mxu0  ;;  %1218 = vmatmul.mubr.f32.gmra.mxu1 %v420_v6 }
  0xe1   :  { %v421_v11 = vmax.f32 %v279_v9, 0.0  ;;  %v294_v13 = vadd.f32 %v1145_v10, %v1537_v57 }
  0xe2   :  { %v288_v14 = vpop.f32.mrf.mxu0 }
  0xe3   :  { %v289_v15 = vadd.f32 %v1537_v57, %v288_v14  ;;  %1220 = vmatprep.mubr.f32.mxu1 %v421_v11  ;;  %v424_v18 = vmax.f32 %v294_v13, 0.0 }
  0xe4   :  { %v1148_v16 = vpop.f32.mrf.mxu0  ;;  %1221 = vmatmul.mubr.f32.gmra.mxu1 %v422_v12 }
  0xe5   :  { %v423_v17 = vmax.f32 %v289_v15, 0.0  ;;  %v304_v19 = vadd.f32 %v1148_v16, %v1537_v57 }
  0xe6   :  { %v298_v20 = vpop.f32.mrf.mxu0 }
  0xe7   :  { %v299_v21 = vadd.f32 %v1537_v57, %v298_v20  ;;  %1223 = vmatprep.mubr.f32.mxu1 %v423_v17  ;;  %v426_v24 = vmax.f32 %v304_v19, 0.0 }
  0xe8   :  { %v1151_v22 = vpop.f32.mrf.mxu0  ;;  %1224 = vmatmul.mubr.f32.gmra.mxu1 %v424_v18 }
  0xe9   :  { %v425_v23 = vmax.f32 %v299_v21, 0.0  ;;  %v314_v25 = vadd.f32 %v1151_v22, %v1537_v57 }
  0xea   :  { %v308_v26 = vpop.f32.mrf.mxu0 }
  0xeb   :  { %v309_v27 = vadd.f32 %v1537_v57, %v308_v26  ;;  %1226 = vmatprep.mubr.f32.mxu1 %v425_v23  ;;  %v428_v30 = vmax.f32 %v314_v25, 0.0 }
  0xec   :  { %v1154_v28 = vpop.f32.mrf.mxu0  ;;  %1227 = vmatmul.mubr.f32.gmra.mxu1 %v426_v24 }
  0xed   :  { %v427_v29 = vmax.f32 %v309_v27, 0.0  ;;  %v324_v31 = vadd.f32 %v1154_v28, %v1537_v57  ;;  %v1574_v27 = vld [vmem:[%s1702_s5] sm:$0x1] }
  0xee   :  { %v318_v32 = vpop.f32.mrf.mxu0  ;;  %1116 = vmatprep.mubr.msk.f32.mxu0 %vm721_vm1, %v1574_v27 }
  0xef   :  { %v319_v33 = vadd.f32 %v1537_v57, %v318_v32  ;;  %1229 = vmatprep.mubr.f32.mxu1 %v427_v29  ;;  %v430_v36 = vmax.f32 %v324_v31, 0.0  ;;  %v56_v29 = vld [vmem:[#allocation2] sm:$0x1] }
  0xf0   :  { %v1157_v34 = vpop.f32.mrf.mxu0  ;;  %1230 = vmatmul.mubr.f32.gmra.mxu1 %v428_v30 }
  0xf1   :  { %v429_v35 = vmax.f32 %v319_v33, 0.0  ;;  %v334_v37 = vadd.f32 %v1157_v34, %v1537_v57 }
  0xf2   :  { %v328_v38 = vpop.f32.mrf.mxu0 }
  0xf3   :  { %v329_v39 = vadd.f32 %v1537_v57, %v328_v38  ;;  %1232 = vmatprep.mubr.f32.mxu1 %v429_v35  ;;  %v432_v42 = vmax.f32 %v334_v37, 0.0 }
  0xf4   :  { %v1160_v40 = vpop.f32.mrf.mxu0  ;;  %1233 = vmatmul.mubr.f32.gmra.mxu1 %v430_v36 }
  0xf5   :  { %v431_v41 = vmax.f32 %v329_v39, 0.0  ;;  %v344_v43 = vadd.f32 %v1160_v40, %v1537_v57 }
  0xf6   :  { %v338_v44 = vpop.f32.mrf.mxu0 }
  0xf7   :  { %v339_v45 = vadd.f32 %v1537_v57, %v338_v44  ;;  %1235 = vmatprep.mubr.f32.mxu1 %v431_v41  ;;  %v434_v48 = vmax.f32 %v344_v43, 0.0 }
  0xf8   :  { %v1163_v46 = vpop.f32.mrf.mxu0  ;;  %1236 = vmatmul.mubr.f32.gmra.mxu1 %v432_v42 }
  0xf9   :  { %v433_v47 = vmax.f32 %v339_v45, 0.0  ;;  %v354_v49 = vadd.f32 %v1163_v46, %v1537_v57 }
  0xfa   :  { %v348_v50 = vpop.f32.mrf.mxu0 }
  0xfb   :  { %v349_v51 = vadd.f32 %v1537_v57, %v348_v50  ;;  %1238 = vmatprep.mubr.f32.mxu1 %v433_v47  ;;  %v436_v54 = vmax.f32 %v354_v49, 0.0 }
  0xfc   :  { %v1166_v52 = vpop.f32.mrf.mxu0  ;;  %1239 = vmatmul.mubr.f32.gmra.mxu1 %v434_v48 }
  0xfd   :  { %v435_v53 = vmax.f32 %v349_v51, 0.0  ;;  %v364_v55 = vadd.f32 %v1166_v52, %v1537_v57 }
  0xfe   :  { %v358_v56 = vpop.f32.mrf.mxu0 }
  0xff   :  { %v359_v58 = vadd.f32 %v1537_v57, %v358_v56  ;;  %1241 = vmatprep.mubr.f32.mxu1 %v435_v53  ;;  %v438_v61 = vmax.f32 %v364_v55, 0.0 }
 0x100   :  { %v1169_v59 = vpop.f32.mrf.mxu0  ;;  %1242 = vmatmul.mubr.f32.gmra.mxu1 %v436_v54 }
 0x101   :  { %v437_v60 = vmax.f32 %v359_v58, 0.0  ;;  %v374_v62 = vadd.f32 %v1169_v59, %v1537_v57 }
 0x102   :  { %v368_v63 = vpop.f32.mrf.mxu0 }
 0x103   :  { %v369_v0 = vadd.f32 %v1537_v57, %v368_v63  ;;  %1244 = vmatprep.mubr.f32.mxu1 %v437_v60  ;;  %v440_v3 = vmax.f32 %v374_v62, 0.0  ;;  %v1611_v60 = vld [vmem:[%s1701_s4] ss:$0 sm:$0xff]  ;;  %s1290_s4 = smov [#allocation3]  }
 0x104   :  { %v1172_v1 = vpop.f32.mrf.mxu0  ;;  %1245 = vmatmul.mubr.f32.gmra.mxu1 %v438_v61  ;;  %s921_s16 = sshll.u32 %s1290_s4, 4  ;;  %s922_s16 = int_to_ptr.vmem [resolvable:$true] %s921_s16 }
 0x105   :  { %v439_v2 = vmax.f32 %v369_v0, 0.0  ;;  %v384_v4 = vadd.f32 %v1172_v1, %v1537_v57  ;;  %s1266_s17 = scalar_lea.vmem %s922_s16, 32  ;;  %p1271_p1 = scmp.lt.s32.totalorder %s922_s16, %s922_s16 }
 0x106   :  { %v378_v5 = vpop.f32.mrf.mxu0  ;;  %p1267_p0 = scmp.ne.s32.totalorder %s922_s16, %s1266_s17  ;;  %p1272_p2 = scmp.lt.s32.totalorder %s1266_s17, %s1266_s17 }
 0x107   :  { %v379_v6 = vadd.f32 %v1537_v57, %v378_v5  ;;  %1247 = vmatprep.mubr.f32.mxu1 %v439_v2  ;;  %v442_v9 = vmax.f32 %v384_v4, 0.0 }
 0x108   :  { %v1175_v7 = vpop.f32.mrf.mxu0  ;;  %1248 = vmatmul.mubr.f32.gmra.mxu1 %v440_v3  ;;  %p1273_p3 = por %p1272_p2, %p1271_p1 }
 0x109   :  { %v441_v8 = vmax.f32 %v379_v6, 0.0  ;;  %v394_v10 = vadd.f32 %v1175_v7, %v1537_v57 }
 0x10a   :  { %v388_v11 = vpop.f32.mrf.mxu0  ;;  %p1274_p4 = pnand %p1273_p3, %p1267_p0 }
 0x10b   :  { %v389_v12 = vadd.f32 %v1537_v57, %v388_v11  ;;  %1250 = vmatprep.mubr.f32.mxu1 %v441_v8  ;;  %v444_v15 = vmax.f32 %v394_v10, 0.0 }
 0x10c   :  { %v1178_v13 = vpop.f32.mrf.mxu0  ;;  %1251 = vmatmul.mubr.f32.gmra.mxu1 %v442_v9 }
 0x10d   :  { %v443_v14 = vmax.f32 %v389_v12, 0.0  ;;  %v404_v16 = vadd.f32 %v1178_v13, %v1537_v57 }
 0x10e   :  { %v398_v17 = vpop.f32.mrf.mxu0 }
 0x10f   :  { %v399_v18 = vadd.f32 %v1537_v57, %v398_v17  ;;  %1253 = vmatprep.mubr.f32.mxu1 %v443_v14  ;;  %v446_v21 = vmax.f32 %v404_v16, 0.0 }
 0x110   :  { %v1181_v19 = vpop.f32.mrf.mxu0  ;;  %1254 = vmatmul.mubr.f32.gmra.mxu1 %v444_v15 }
 0x111   :  { %v445_v20 = vmax.f32 %v399_v18, 0.0  ;;  %v414_v22 = vadd.f32 %v1181_v19, %v1537_v57 }
 0x112   :  { %v408_v23 = vpop.f32.mrf.mxu0 }
 0x113   :  { %v409_v24 = vadd.f32 %v1537_v57, %v408_v23  ;;  %1256 = vmatprep.mubr.f32.mxu1 %v445_v20  ;;  %v448_v26 = vmax.f32 %v414_v22, 0.0  ;;  %v1288_v57 = vmov 0  }
 0x114   :  { %1257 = vmatmul.mubr.f32.gmra.mxu1 %v446_v21  ;;  %1265 = vset.pattern.permute.xlu0 %v1288_v57 }
 0x115   :  { %v447_v25 = vmax.f32 %v409_v24, 0.0  ;;  %714 = vperm.xlu0 %1265, %v56_v29  }
 0x117   :  { %1259 = vmatprep.mubr.f32.mxu1 %v447_v25 }
 0x118   :  { %1260 = vmatmul.mubr.f32.gmra.mxu1 %v448_v26 }
 0x19c   :  { %v1578_v28 = vpop.f32.mrf.mxu1 }
 0x19e   :  { %v1580_v30 = vpop.f32.mrf.mxu1 }
 0x1a0   :  { %v1582_v31 = vpop.f32.mrf.mxu1 }
 0x1a2   :  { %v1584_v32 = vpop.f32.mrf.mxu1 }
 0x1a4   :  { %v1586_v33 = vpop.f32.mrf.mxu1 }
 0x1a6   :  { %v1588_v34 = vpop.f32.mrf.mxu1 }
 0x1a8   :  { %v1590_v35 = vpop.f32.mrf.mxu1 }
 0x1aa   :  { %v1592_v36 = vpop.f32.mrf.mxu1 }
 0x1ac   :  { %v1228_v37 = vpop.f32.mrf.mxu1 }
 0x1ad   :  { %v567_v23 = vadd.f32 %v1228_v37, %v1611_v60  ;;  %v557_v37 = vadd.f32 %v1590_v35, %v1611_v60  ;;  %v547_v35 = vadd.f32 %v1586_v33, %v1611_v60  ;;  %v537_v33 = vadd.f32 %v1582_v31, %v1611_v60 }
 0x1ae   :  { %v1594_v38 = vpop.f32.mrf.mxu1  ;;  %v527_v31 = vadd.f32 %v1578_v28, %v1611_v60  ;;  %v717_v28 = vlaneseq }
 0x1af   :  { %v689_v29 = vmax.f32 %v567_v23, 0.0  ;;  %v562_v57 = vadd.f32 %v1611_v60, %v1594_v38  ;;  %v552_v38 = vadd.f32 %v1611_v60, %v1592_v36  ;;  %v685_v36 = vmax.f32 %v547_v35, 0.0 }
 0x1b0   :  { %v1231_v39 = vpop.f32.mrf.mxu1  ;;  %vm912_vm2 = vcmp.lt.s32.totalorder %v717_v28, 256 }
 0x1b1   :  { %v577_v15 = vadd.f32 %v1231_v39, %v1611_v60 }
 0x1b2   :  { %v571_v40 = vpop.f32.mrf.mxu1 }
 0x1b3   :  { %v691_v19 = vmax.f32 %v577_v15, 0.0  ;;  %v572_v20 = vadd.f32 %v1611_v60, %v571_v40 }
 0x1b4   :  { %v1234_v41 = vpop.f32.mrf.mxu1 }
 0x1b5   :  { %v587_v7 = vadd.f32 %v1234_v41, %v1611_v60  ;;  %v690_v24 = vmax.f32 %v572_v20, 0.0  ;;  %v688_v41 = vmax.f32 %v562_v57, 0.0 }
 0x1b6   :  { %v581_v42 = vpop.f32.mrf.mxu1 }
 0x1b7   :  { %v693_v11 = vmax.f32 %v587_v7, 0.0  ;;  %v582_v12 = vadd.f32 %v1611_v60, %v581_v42  ;;  %v715_v7 = vpop.permute.xlu0 %714 }
 0x1b8   :  { %v1237_v43 = vpop.f32.mrf.mxu1 }
 0x1b9   :  { %v597_v61 = vadd.f32 %v1237_v43, %v1611_v60  ;;  %v692_v16 = vmax.f32 %v582_v12, 0.0 }
 0x1ba   :  { %v591_v44 = vpop.f32.mrf.mxu1 }
 0x1bb   :  { %v695_v3 = vmax.f32 %v597_v61, 0.0  ;;  %v592_v4 = vadd.f32 %v1611_v60, %v591_v44  ;;  %v687_v44 = vmax.f32 %v557_v37, 0.0 }
 0x1bc   :  { %v1596_v45 = vpop.f32.mrf.mxu1 }
 0x1bd   :  { %v694_v8 = vmax.f32 %v592_v4, 0.0 }
 0x1be   :  { %v1598_v46 = vpop.f32.mrf.mxu1 }
 0x1c0   :  { %v1600_v47 = vpop.f32.mrf.mxu1 }
 0x1c2   :  { %v1602_v48 = vpop.f32.mrf.mxu1 }
 0x1c3   :  { %v612_v61 = vadd.f32 %v1611_v60, %v1602_v48 }
 0x1c4   :  { %v1604_v49 = vpop.f32.mrf.mxu1 }
 0x1c6   :  { %v1606_v50 = vpop.f32.mrf.mxu1 }
 0x1c8   :  { %v1249_v51 = vpop.f32.mrf.mxu1 }
 0x1c9   :  { %v637_v39 = vadd.f32 %v1249_v51, %v1611_v60  ;;  %v627_v51 = vadd.f32 %v1604_v49, %v1611_v60  ;;  %v542_v49 = vadd.f32 %v1611_v60, %v1588_v34  ;;  %v683_v34 = vmax.f32 %v537_v33, 0.0 }
 0x1ca   :  { %v631_v52 = vpop.f32.mrf.mxu1 }
 0x1cb   :  { %v703_v42 = vmax.f32 %v637_v39, 0.0  ;;  %v632_v43 = vadd.f32 %v1611_v60, %v631_v52  ;;  %v686_v52 = vmax.f32 %v552_v38, 0.0 }
 0x1cc   :  { %v1252_v53 = vpop.f32.mrf.mxu1 }
 0x1cd   :  { %v647_v21 = vadd.f32 %v1252_v53, %v1611_v60  ;;  %v702_v53 = vmax.f32 %v632_v43, 0.0 }
 0x1ce   :  { %v641_v54 = vpop.f32.mrf.mxu1 }
 0x1cf   :  { %v705_v25 = vmax.f32 %v647_v21, 0.0  ;;  %v642_v26 = vadd.f32 %v1611_v60, %v641_v54  ;;  %v701_v54 = vmax.f32 %v627_v51, 0.0 }
 0x1d0   :  { %v1255_v55 = vpop.f32.mrf.mxu1 }
 0x1d1   :  { %v657_v13 = vadd.f32 %v1255_v55, %v1611_v60  ;;  %v704_v40 = vmax.f32 %v642_v26, 0.0  ;;  %v622_v55 = vadd.f32 %v1611_v60, %v1606_v50  ;;  %v684_v50 = vmax.f32 %v542_v49, 0.0 }
 0x1d2   :  { %v651_v56 = vpop.f32.mrf.mxu1 }
 0x1d3   :  { %v707_v17 = vmax.f32 %v657_v13, 0.0  ;;  %v652_v18 = vadd.f32 %v1611_v60, %v651_v56  ;;  %v617_v56 = vadd.f32 %v1600_v47, %v1611_v60  ;;  %v532_v47 = vadd.f32 %v1611_v60, %v1584_v32 }
 0x1d4   :  { %v1258_v58 = vpop.f32.mrf.mxu1  ;;  %v681_v32 = vmax.f32 %v527_v31, 0.0 }
 0x1d5   :  { %v667_v5 = vadd.f32 %v1258_v58, %v1611_v60  ;;  %v706_v22 = vmax.f32 %v652_v18, 0.0  ;;  %v700_v58 = vmax.f32 %v622_v55, 0.0  ;;  %v682_v48 = vmax.f32 %v532_v47, 0.0 }
 0x1d6   :  { %v661_v59 = vpop.f32.mrf.mxu1 }
 0x1d7   :  { %v709_v9 = vmax.f32 %v667_v5, 0.0  ;;  %v662_v10 = vadd.f32 %v1611_v60, %v661_v59  ;;  %v699_v59 = vmax.f32 %v617_v56, 0.0  ;;  %v1289_v5 = vmov 1966171168  }
 0x1d8   :  { %v1261_v62 = vpop.f32.mrf.mxu1 }
 0x1d9   :  { %v677_v63 = vadd.f32 %v1261_v62, %v1611_v60  ;;  %v708_v14 = vmax.f32 %v662_v10, 0.0  ;;  %v607_v62 = vadd.f32 %v1596_v45, %v1611_v60  ;;  %v522_v45 = vadd.f32 %v1611_v60, %v1580_v30 }
 0x1da   :  { %v671_v0 = vpop.f32.mrf.mxu1 }
 0x1db   :  { %v711_v1 = vmax.f32 %v677_v63, 0.0  ;;  %v672_v2 = vadd.f32 %v1611_v60, %v671_v0  ;;  %v698_v63 = vmax.f32 %v612_v61, 0.0  ;;  %v697_v0 = vmax.f32 %v607_v62, 0.0 }
 0x1dd   :  { %v710_v6 = vmax.f32 %v672_v2, 0.0  ;;  %1084 = vmatprep.subr.msk.mxu0 %vm721_vm1, %v711_v1  ;;  %v602_v1 = vadd.f32 %v1611_v60, %v1598_v46  ;;  %v718_v46 = vshrl.u32 %v717_v28, 7 }
 0x1de   :  { %1085 = vmatpush3.xpose.msk.msra.mxu0 %vm721_vm1, %v695_v3  ;;  %v680_v3 = vmax.f32 %v522_v45, 0.0 }
 0x1df   :  { %1086 = vmatprep.subr.msk.mxu0 %vm721_vm1, %v710_v6  ;;  %v696_v2 = vmax.f32 %v602_v1, 0.0  ;;  %v719_v4 = vsub.s32 0, %v718_v46  ;;  %v896_v6 = vunpack.c.l.s4 %v1289_v5 }
 0x1e2   :  { %1087 = vmatpush3.xpose.msk.msra.mxu0 %vm721_vm1, %v694_v8  ;;  %v720_v8 = vrot.slane %v715_v7, %v719_v4 }
 0x1e3   :  { %1088 = vmatprep.subr.msk.mxu0 %vm721_vm1, %v709_v9  ;;  %v897_v9 = vunpack.c.0.s8 %v896_v6 }
 0x1e5   :  { %v900_v12 = vsub.s32 %v897_v9, %v718_v46 }
 0x1e6   :  { %1089 = vmatpush3.xpose.msk.msra.mxu0 %vm721_vm1, %v693_v11 }
 0x1e7   :  { %1090 = vmatprep.subr.msk.mxu0 %vm721_vm1, %v708_v14 }
 0x1ea   :  { %1091 = vmatpush3.xpose.msk.msra.mxu0 %vm721_vm1, %v692_v16 }
 0x1eb   :  { %1092 = vmatprep.subr.msk.mxu0 %vm721_vm1, %v707_v17 }
 0x1ee   :  { %1093 = vmatpush3.xpose.msk.msra.mxu0 %vm721_vm1, %v691_v19 }
 0x1ef   :  { %1094 = vmatprep.subr.msk.mxu0 %vm721_vm1, %v706_v22 }
 0x1f2   :  { %1095 = vmatpush3.xpose.msk.msra.mxu0 %vm721_vm1, %v690_v24 }
 0x1f3   :  { %1096 = vmatprep.subr.msk.mxu0 %vm721_vm1, %v705_v25 }
 0x1f6   :  { %1097 = vmatpush3.xpose.msk.msra.mxu0 %vm721_vm1, %v689_v29 }
 0x1f7   :  { %1098 = vmatprep.subr.msk.mxu0 %vm721_vm1, %v704_v40 }
 0x1fa   :  { %1099 = vmatpush3.xpose.msk.msra.mxu0 %vm721_vm1, %v688_v41 }
 0x1fb   :  { %1100 = vmatprep.subr.msk.mxu0 %vm721_vm1, %v703_v42 }
 0x1fe   :  { %1101 = vmatpush3.xpose.msk.msra.mxu0 %vm721_vm1, %v687_v44 }
 0x1ff   :  { %1102 = vmatprep.subr.msk.mxu0 %vm721_vm1, %v702_v53 }
 0x202   :  { %1103 = vmatpush3.xpose.msk.msra.mxu0 %vm721_vm1, %v686_v52 }
 0x203   :  { %1104 = vmatprep.subr.msk.mxu0 %vm721_vm1, %v701_v54 }
 0x206   :  { %1105 = vmatpush3.xpose.msk.msra.mxu0 %vm721_vm1, %v685_v36 }
 0x207   :  { %1106 = vmatprep.subr.msk.mxu0 %vm721_vm1, %v700_v58 }
 0x20a   :  { %1107 = vmatpush3.xpose.msk.msra.mxu0 %vm721_vm1, %v684_v50 }
 0x20b   :  { %1108 = vmatprep.subr.msk.mxu0 %vm721_vm1, %v699_v59 }
 0x20e   :  { %1109 = vmatpush3.xpose.msk.msra.mxu0 %vm721_vm1, %v683_v34 }
 0x20f   :  { %1110 = vmatprep.subr.msk.mxu0 %vm721_vm1, %v698_v63 }
 0x212   :  { %1111 = vmatpush3.xpose.msk.msra.mxu0 %vm721_vm1, %v682_v48 }
 0x213   :  { %1112 = vmatprep.subr.msk.mxu0 %vm721_vm1, %v697_v0 }
 0x216   :  { %1113 = vmatpush3.xpose.msk.msra.mxu0 %vm721_vm1, %v681_v32 }
 0x217   :  { %1114 = vmatprep.subr.msk.mxu0 %vm721_vm1, %v696_v2 }
 0x21a   :  { %1115 = vmatpush3.xpose.msk.msra.mxu0 %vm721_vm1, %v680_v3 }
 0x21d   :  { %1117 = vmatmul.mubr.msk.f32.vlgmr.msra.gmra.mxu0 %vm721_vm1, %v1574_v27 }
 0x2dd   :  { %v887_v30 = vpop.f32.mrf.mxu0 }
 0x2de   :  { %v888_v10 = vadd.f32 %v887_v30, %v720_v8 }
 0x2df   :  { %v889_v60 = vpop.f32.mrf.mxu0 }
 0x2e0   :  { %v890_v11 = vadd.f32 %v889_v60, %v720_v8 }
 0x2e2   :  { %v894_v13 = vcombine.low %v888_v10, %v890_v11 }
 0x2e4   :  { %v901_v14 = vrot.slane %v894_v13, %v900_v12 }
 0x2e6   :  { %v908_v15 = vrot.slane %v901_v14, %v900_v12 }
 0x2e8   :  { %914 = vst.msk [vmem:[#allocation3] sm:$0x3] %vm912_vm2, %v908_v15 }
 0x2e9   :  { %1277 = shalt.err (!%p1274_p4)
}
 0x2ea   :  { %924 = dma.vmem_to_hbm [thread:$0]  %s922_s16, 32, %s1704_s7, [#allocation4]  }
 0x2eb   :  { %1286 = dma.done.wait [#allocation4], 32  }
 0x2ec   :  { %1287 = vsyncadd [#allocation4], 4294967264 }
 0x2ed   :  { %928 = vsyncpa [#allocation4], 1 }

</bundles_post_ra>
